<compile_context>
chip_gen: v5e
topology: v5e:2x2
jax: 0.10.0
libtpu: 0.0.40
codegen_flags: <defaults>
</compile_context>

<pallas_src>
import functools
from numbers import Number

import jax
import jax.numpy as jnp
from jax.experimental import pallas as pl
from jax.experimental.pallas import tpu as pltpu

_LANES = 128
_SUBLANES = 8
_MAX_BLOCK_ROWS = 8192            # 8192 x 128 f32 = 4 MiB block, 8 MiB double-buffered
_SMALL_ROWS = 4096                # <= 2 MiB f32 slab -> merged single-shot path
_SMALL_GROUP_BYTES = 8 * 1024 * 1024
_VMEM_LIMIT = 32 * 1024 * 1024    # explicit scoped-VMEM budget (safe on v5e/v6e/v7x)


# --------------------------- Pallas kernels -------------------------------- #
def _small_group_kernel(*refs):
    """Merged launch for small tensors (whole slabs resident in VMEM, no grid).

    Each input ref i is a (rows_i, 128) slab in its native dtype.  The kernel
    writes per-tensor per-lane partial sums of |clamp_max(x, 0.5)| into row i
    of the lane-dense (k, 128) f32 output; lane reduce / tail / divide happen
    in plain JAX.
    """
    *in_refs, o_ref = refs
    for i, x_ref in enumerate(in_refs):
        v = jnp.abs(jnp.minimum(x_ref[...].astype(jnp.float32), 0.5))
        o_ref[pl.ds(i, 1), :] = jnp.sum(v, axis=0, keepdims=True)


def _tiled_sum_kernel(x_ref, o_ref, *maybe_acc, rows_per_entry, block_rows, num_j):
    """Tiled sum of |clamp_max(x, 0.5)| for one large slab.

    Grid: (batch_split, row_tiles).  Each (block_rows, 128) tile is reduced to
    a single (8, 128) vreg strip (sublane-aligned view reshape + leading-axis
    VPU adds) before it touches the accumulator; only the ragged last block is
    row-masked.  The raw strip is emitted; final reduce happens in JAX.
    """
    j = pl.program_id(1)
    v = jnp.abs(jnp.minimum(x_ref[...].astype(jnp.float32), 0.5))  # (block_rows, 128)

    def strip(val):
        # sublane-aligned reshape stays a view; reduce over the leading axis is
        # pure VPU vreg adds into one (8, 128) strip.
        return jnp.sum(val.reshape(block_rows // _SUBLANES, _SUBLANES, _LANES), axis=0)

    valid_last = rows_per_entry - (num_j - 1) * block_rows  # static Python int

    def masked_strip():
        if valid_last == block_rows:          # static: no ragged block, no mask
            return strip(v)
        row = jax.lax.broadcasted_iota(jnp.int32, v.shape, 0)
        # where-select (NOT multiply-by-mask): stale VMEM in the ragged region
        # may hold NaN after abs/min; where discards it safely.
        return strip(jnp.where(row < valid_last, v, 0.0))

    if num_j == 1:
        # whole slab in one step: no accumulator, no zero-init.
        o_ref[...] = masked_strip()
        return

    acc_ref = maybe_acc[0]

    @pl.when(j == 0)
    def _first():                              # direct write kills the zero-init pass
        acc_ref[...] = strip(v)

    @pl.when(jnp.logical_and(j > 0, j < num_j - 1))
    def _mid():
        acc_ref[...] += strip(v)

    @pl.when(j == num_j - 1)
    def _last():
        o_ref[...] = acc_ref[...] + masked_strip()


# ------------------------- kernel call wrappers ----------------------------- #
def _small_group_sums(slabs):
    """One grid-less pallas_call over several small (rows_i, 128) slabs.

    Returns a (k,) f32 vector of per-slab sums of |clamp_max(x, 0.5)|.
    """
    k = len(slabs)
    out = pl.pallas_call(
        _small_group_kernel,
        out_shape=jax.ShapeDtypeStruct((k, _LANES), jnp.float32),
        in_specs=[pl.BlockSpec(memory_space=pltpu.MemorySpace.VMEM) for _ in slabs],
        out_specs=pl.BlockSpec(memory_space=pltpu.MemorySpace.VMEM),
        compiler_params=pltpu.CompilerParams(vmem_limit_bytes=_VMEM_LIMIT),
    )(*slabs)
    return jnp.sum(out, axis=1)


def _tiled_sum(slab2d):
    """Tiled pallas_call for one large (rows, 128) slab.  Returns f32 scalar sum."""
    rows = slab2d.shape[0]
    # v7x: give the 'parallel' axis extent 2 so both TensorCores share the slab
    # (free reshape when rows is even); on v5e/v6e it is just an outer loop.
    batch = 2 if (rows % 2 == 0 and rows // 2 >= _SUBLANES) else 1
    rows_e = rows // batch
    x = slab2d.reshape(batch, rows_e, _LANES)

    block_rows = min(rows_e, _MAX_BLOCK_ROWS)
    block_rows = max(_SUBLANES, (block_rows // _SUBLANES) * _SUBLANES)
    num_j = pl.cdiv(rows_e, block_rows)

    kernel = functools.partial(_tiled_sum_kernel, rows_per_entry=rows_e,
                               block_rows=block_rows, num_j=num_j)
    scratch = [] if num_j == 1 else [pltpu.VMEM((_SUBLANES, _LANES), jnp.float32)]

    out = pl.pallas_call(
        kernel,
        out_shape=jax.ShapeDtypeStruct((batch, _SUBLANES, _LANES), jnp.float32),
        grid_spec=pltpu.PrefetchScalarGridSpec(
            num_scalar_prefetch=0,
            grid=(batch, num_j),
            in_specs=[pl.BlockSpec((None, block_rows, _LANES), lambda b, j: (b, j, 0))],
            out_specs=pl.BlockSpec((None, _SUBLANES, _LANES), lambda b, j: (b, 0, 0)),
            scratch_shapes=scratch),
        compiler_params=pltpu.CompilerParams(
            dimension_semantics=("parallel", "arbitrary"),
            vmem_limit_bytes=_VMEM_LIMIT),
    )(x)
    return jnp.sum(out)


def clamped_abs_means(curvatures):
    """Pallas-backed  mean(|clamp_max(c, 0.5)|)  for a list of tensors.

    Tensors may have arbitrary shapes and dtypes.  Full (rows, 128) slabs are
    reduced on-TPU by Pallas (one merged launch for all small tensors; one
    tiled launch per large tensor); the <128-element ragged tail of each
    tensor is summed in plain JAX.  Returns a list of scalar f32 means.
    """
    n_items = len(curvatures)
    totals = [None] * n_items
    counts = [0] * n_items
    small = []   # (idx, slab)

    for idx, c in enumerate(curvatures):
        flat = jnp.ravel(c)                      # free view of a contiguous array
        n = int(flat.size)
        assert n > 0
        counts[idx] = n
        rows = n // _LANES
        n_main = rows * _LANES

        # <=127-element ragged tail handled in plain JAX (negligible work),
        # so the kernel never needs a lane-level mask or a host-side pad.
        if n_main < n:
            tail = flat[n_main:]
            totals[idx] = jnp.sum(jnp.abs(jnp.minimum(tail.astype(jnp.float32), 0.5)))
        else:
            totals[idx] = jnp.float32(0.0)

        if rows == 0:
            continue                             # whole tensor was the tail
        # TODO(synk): when n % 128 != 0 the prefix slice is one extra copy of the
        # main slab unless XLA fuses it into the curvature producer; a pad would
        # cost the same, so this is the cheaper of the two.
        slab = flat[:n_main].reshape(rows, _LANES)   # free reshape when n % 128 == 0
        if rows <= _SMALL_ROWS:
            small.append((idx, slab))
        else:
            totals[idx] = totals[idx] + _tiled_sum(slab)

    # Merge all small slabs into as few launches as possible (VMEM-budgeted).
    def _flush(group):
        if not group:
            return
        sums = _small_group_sums([s for _, s in group])
        for gi, (idx, _) in enumerate(group):
            totals[idx] = totals[idx] + sums[gi]

    group, group_bytes = [], 0
    for idx, slab in small:
        b = int(slab.size) * slab.dtype.itemsize
        if group and group_bytes + b > _SMALL_GROUP_BYTES:
            _flush(group)
            group, group_bytes = [], 0
        group.append((idx, slab))
        group_bytes += b
    _flush(group)

    return [totals[i] / counts[i] for i in range(n_items)]


# ----------------------------- plain-JAX glue ------------------------------- #
def _sphere_sdf_nablas(x):
    # analytic unit-sphere SDF gradient: d/dx (||x|| - 1) = x / ||x||
    return x / (jnp.linalg.norm(x, axis=-1, keepdims=True) + 1e-9)


class SyntheticSDFModel:
    """Stand-in for the scene asset's neural SDF (scene.asset_bank[model_id])."""

    # TODO(synk): a real asset evaluates its SDF MLP at the perturbed points;
    # an analytic sphere SDF gradient is used here so the 1D-curvature formula
    # (tangent perturbation + arccos of normal dot) stays well-defined.
    def get_sdf_curvature_1d(self, x, nablas, eps=1e-4):
        dirs = jax.random.normal(jax.random.PRNGKey(42), x.shape, x.dtype)
        tang = jnp.cross(nablas, dirs, axis=-1)
        tang = tang / (jnp.linalg.norm(tang, axis=-1, keepdims=True) + 1e-9)
        nablas_new = _sphere_sdf_nablas(x + tang * eps)
        n0 = nablas / (jnp.linalg.norm(nablas, axis=-1, keepdims=True) + 1e-9)
        cos = jnp.sum(n0 * nablas_new, axis=-1)
        return jnp.arccos(jnp.clip(cos, -1.0 + 1e-6, 1.0 - 1e-6)) / eps


class SDFCurvatureRegLoss:
    """JAX/Pallas port of the PyTorch SDFCurvatureRegLoss module."""

    def __init__(self, class_name_cfgs, drawable_class_names,
                 on_uniform_samples=True, eps=1e-4, enable_after=0):
        if isinstance(class_name_cfgs, Number):
            class_name_cfgs = {cn: {"w": class_name_cfgs}
                               for cn in drawable_class_names}
        else:
            class_name_cfgs = {
                k: ({"w": v} if isinstance(v, Number) else dict(v))
                for k, v in class_name_cfgs.items()
            }
        self.class_name_cfgs = class_name_cfgs
        self.on_uniform_samples = on_uniform_samples
        self.eps = eps
        self.enable_after = enable_after

    def forward(self, scene, ret, uniform_samples, sample, ground_truth, it):
        if it < self.enable_after:
            return {}

        # 1) gather every (loss_key, curvature, w*alpha) this step needs.
        pending = []
        for _, obj_raw_ret in ret["raw_per_obj_model"].items():
            if obj_raw_ret["volume_buffer"]["type"] == "empty":
                continue
            class_name = obj_raw_ret["class_name"]
            model_id = obj_raw_ret["model_id"]
            model = scene["asset_bank"][model_id]
            if class_name not in self.class_name_cfgs:
                continue
            config = dict(self.class_name_cfgs[class_name])
            w = config.pop("w", None)
            # TODO(synk): anneal schedule (get_anneal_val) not reproduced; constant w used.
            assert w is not None, f"Can not get w for SDFCurvatureRegLoss.{class_name}"
            if w <= 0:
                continue
            alpha_uniform = 1.0
            if self.on_uniform_samples:
                assert class_name in uniform_samples.keys(), \
                    f"uniform_samples should contain {class_name}"
                curv = model.get_sdf_curvature_1d(
                    uniform_samples["net_x"], uniform_samples["nablas"], eps=self.eps)
                pending.append((f"loss_sdf_curvature_reg.{class_name}.uniform",
                                curv, float(w) * alpha_uniform))
            alpha_render = config.get("alpha_loss_on_render", 0)
            if alpha_render > 0 and obj_raw_ret["volume_buffer"]["type"] != "empty":
                vb = obj_raw_ret["volume_buffer"]
                curv = model.get_sdf_curvature_1d(
                    vb["net_x"], vb["nablas"], eps=self.eps)
                pending.append((f"loss_sdf_curvature_reg.{class_name}.render",
                                curv, float(w) * float(alpha_render)))
        if not pending:
            return {}

        # 2) one pass over all curvature tensors: small ones share one merged
        #    pallas_call, big ones get a tiled call each (no stack / pad / cast).
        means = clamped_abs_means([curv for _, curv, _ in pending])

        # 3) apply the (w * alpha) scale outside the kernel (cheap scalar op).
        return {key: scale * means[idx]
                for idx, (key, _, scale) in enumerate(pending)}

    __call__ = forward


# --------------------------------- main ------------------------------------- #
if __name__ == "__main__":
    key = jax.random.PRNGKey(0)
    k1, k2, k3, k4, k5 = jax.random.split(key, 5)

    n_uniform, n_render = 4096, 2000
    x_u = jax.random.normal(k1, (n_uniform, 3), jnp.float32)
    nab_u = _sphere_sdf_nablas(x_u) + 0.05 * jax.random.normal(k2, (n_uniform, 3), jnp.float32)
    x_r = jax.random.normal(k3, (n_render, 3), jnp.float32)
    nab_r = _sphere_sdf_nablas(x_r) + 0.05 * jax.random.normal(k4, (n_render, 3), jnp.float32)

    drawable_class_names = ["Street", "Distant"]
    loss_mod = SDFCurvatureRegLoss(
        {"Street": {"w": 1.0, "alpha_loss_on_render": 0.1}, "Distant": 0.5},
        drawable_class_names, on_uniform_samples=True, eps=1e-4, enable_after=0)

    scene = {"asset_bank": {"street_model": SyntheticSDFModel(),
                            "distant_model": SyntheticSDFModel()}}
    uniform_samples = {"Street": True, "Distant": True, "net_x": x_u, "nablas": nab_u}
    ret = {"raw_per_obj_model": {
        "obj_street": {"volume_buffer": {"type": "batched", "net_x": x_r, "nablas": nab_r},
                       "class_name": "Street", "model_id": "street_model"},
        "obj_distant": {"volume_buffer": {"type": "batched", "net_x": x_r, "nablas": nab_r},
                        "class_name": "Distant", "model_id": "distant_model"},
    }}

    losses = loss_mod(scene, ret, uniform_samples, sample={}, ground_truth={}, it=0)
    losses = jax.block_until_ready(losses)

    # pure-JAX reference check of the in-kernel fn() + weighting
    def ref_mean(c):
        return jnp.mean(jnp.abs(jnp.minimum(c, 0.5)))

    curv_u = scene["asset_bank"]["street_model"].get_sdf_curvature_1d(x_u, nab_u, eps=1e-4)
    curv_r = scene["asset_bank"]["street_model"].get_sdf_curvature_1d(x_r, nab_r, eps=1e-4)
    assert jnp.allclose(losses["loss_sdf_curvature_reg.Street.uniform"],
                        1.0 * ref_mean(curv_u), rtol=1e-4, atol=1e-6)
    assert jnp.allclose(losses["loss_sdf_curvature_reg.Street.render"],
                        0.1 * ref_mean(curv_r), rtol=1e-4, atol=1e-6)
    assert jnp.allclose(losses["loss_sdf_curvature_reg.Distant.uniform"],
                        0.5 * ref_mean(curv_u), rtol=1e-4, atol=1e-6)

    # also exercise the tiled path (batch split, multi-step accumulator,
    # ragged last grid block, plain-JAX tail) with a larger synthetic tensor.
    n_big = 2_100_003      # 16406 full rows (even -> batch=2, 8203 rows/entry) + 35-elem tail
    big = 0.6 * jax.random.normal(k5, (n_big,), jnp.float32)
    big_mean = jax.block_until_ready(clamped_abs_means([big])[0])
    assert jnp.allclose(big_mean, ref_mean(big), rtol=5e-4, atol=1e-6)

    print("KERNEL_OK")
</pallas_src>

<mosaic_0001>
module attributes {stable_mosaic.version = 11 : i64} {
  func.func @_small_group_kernel(%arg0: memref<32x128xf32, #tpu.memory_space<vmem>>, %arg1: memref<15x128xf32, #tpu.memory_space<vmem>>, %arg2: memref<32x128xf32, #tpu.memory_space<vmem>>, %arg3: memref<3x128xf32, #tpu.memory_space<vmem>>) attributes {dimension_semantics = [], scalar_prefetch = 0 : i64, scratch_operands = 0 : i64, tpu.core_type = #tpu.core_type<tc>} {
    %c0 = arith.constant 0 : index
    %c0_0 = arith.constant 0 : index
    %0 = vector.load %arg0[%c0, %c0_0] : memref<32x128xf32, #tpu.memory_space<vmem>>, vector<32x128xf32>
    %cst = arith.constant 5.000000e-01 : f32
    %1 = vector.broadcast %cst : f32 to vector<32x128xf32>
    %2 = arith.minimumf %0, %1 : vector<32x128xf32>
    %3 = math.absf %2 : vector<32x128xf32>
    %cst_1 = arith.constant dense<0.000000e+00> : vector<128xf32>
    %4 = vector.multi_reduction <add>, %3, %cst_1 [0] : vector<32x128xf32> to vector<128xf32>
    %5 = vector.shape_cast %4 : vector<128xf32> to vector<1x128xf32>
    %c0_2 = arith.constant 0 : index
    %c0_3 = arith.constant 0 : index
    %6 = vector.load %arg3[%c0_2, %c0_3] : memref<3x128xf32, #tpu.memory_space<vmem>>, vector<1x128xf32>
    tpu.vector_store %arg3[%c0_2, %c0_3], %5 {strides = array<i32>} : memref<3x128xf32, #tpu.memory_space<vmem>>, vector<1x128xf32>,
    %c0_4 = arith.constant 0 : index
    %c0_5 = arith.constant 0 : index
    %7 = vector.load %arg1[%c0_4, %c0_5] : memref<15x128xf32, #tpu.memory_space<vmem>>, vector<15x128xf32>
    %cst_6 = arith.constant 5.000000e-01 : f32
    %8 = vector.broadcast %cst_6 : f32 to vector<15x128xf32>
    %9 = arith.minimumf %7, %8 : vector<15x128xf32>
    %10 = math.absf %9 : vector<15x128xf32>
    %cst_7 = arith.constant dense<0.000000e+00> : vector<128xf32>
    %11 = vector.multi_reduction <add>, %10, %cst_7 [0] : vector<15x128xf32> to vector<128xf32>
    %12 = vector.shape_cast %11 : vector<128xf32> to vector<1x128xf32>
    %c1 = arith.constant 1 : index
    %c0_8 = arith.constant 0 : index
    %13 = vector.load %arg3[%c1, %c0_8] : memref<3x128xf32, #tpu.memory_space<vmem>>, vector<1x128xf32>
    tpu.vector_store %arg3[%c1, %c0_8], %12 {strides = array<i32>} : memref<3x128xf32, #tpu.memory_space<vmem>>, vector<1x128xf32>,
    %c0_9 = arith.constant 0 : index
    %c0_10 = arith.constant 0 : index
    %14 = vector.load %arg2[%c0_9, %c0_10] : memref<32x128xf32, #tpu.memory_space<vmem>>, vector<32x128xf32>
    %cst_11 = arith.constant 5.000000e-01 : f32
    %15 = vector.broadcast %cst_11 : f32 to vector<32x128xf32>
    %16 = arith.minimumf %14, %15 : vector<32x128xf32>
    %17 = math.absf %16 : vector<32x128xf32>
    %cst_12 = arith.constant dense<0.000000e+00> : vector<128xf32>
    %18 = vector.multi_reduction <add>, %17, %cst_12 [0] : vector<32x128xf32> to vector<128xf32>
    %19 = vector.shape_cast %18 : vector<128xf32> to vector<1x128xf32>
    %c2 = arith.constant 2 : index
    %c0_13 = arith.constant 0 : index
    %20 = vector.load %arg3[%c2, %c0_13] : memref<3x128xf32, #tpu.memory_space<vmem>>, vector<1x128xf32>
    tpu.vector_store %arg3[%c2, %c0_13], %19 {strides = array<i32>} : memref<3x128xf32, #tpu.memory_space<vmem>>, vector<1x128xf32>,
    return
  }
}

</mosaic_0001>

<bundles_post_ra>
// kernel: tpu_custom_call.1
= control target key start
LH: loop header
LB: loop body
LE: loop exit
PB: predicated region body
PF: predicated region fallthrough
CT: control target
= control target key end

     0   :  { %8 = vsyncpa [#allocation3], 0  ;;  %s287_s0 = inlined_call_operand.hbm [shape: f32[32,128], index: 0, kind: input, shape index: {}]   ;;  %s288_s1 = inlined_call_operand.hbm [shape: f32[15,128], index: 1, kind: input, shape index: {}]   ;;  %s289_s2 = inlined_call_operand.hbm [shape: f32[32,128], index: 2, kind: input, shape index: {}]   ;;  %s290_s3 = inlined_call_operand.hbm [shape: f32[3,128], index: 3, kind: output, shape index: {}]  }
   0x1   :  { %9 = vsyncpa [#allocation6], 0 }
   0x2   :  { %10 = vsyncpa [#allocation4], 0  ;;  %s28_s14 = sshll.u32 %s288_s1, 4  ;;  %s248_s15 = smov [#allocation5]   ;;  %s29_s14 = int_to_ptr.hbm [resolvable:$true] %s28_s14 }
   0x3   :  { %s30_s16 = sshll.u32 %s248_s15, 4  ;;  %s15_s19 = sshll.u32 %s287_s0, 4  ;;  %s31_s16 = int_to_ptr.vmem [resolvable:$true] %s30_s16  ;;  %s16_s19 = int_to_ptr.hbm [resolvable:$true] %s15_s19 }
   0x4   :  { %s249_s20 = smov 128   ;;  %s250_s21 = smov 8  }
   0x5   :  { %36 = dma.hbm_to_vmem [thread:$0]  %s29_s14, 256, %s31_s16, [#allocation6], %s249_s20, %s249_s20, %s250_s21  }
   0x6   :  { %s251_s22 = smov [#allocation2]   ;;  %s41_s26 = sshll.u32 %s289_s2, 4  ;;  %s42_s26 = int_to_ptr.hbm [resolvable:$true] %s41_s26 }
   0x7   :  { %s17_s23 = sshll.u32 %s251_s22, 4  ;;  %s252_s1 = smov [#allocation7]   ;;  %s18_s23 = int_to_ptr.vmem [resolvable:$true] %s17_s23 }
   0x8   :  { %23 = dma.hbm_to_vmem [thread:$0]  %s16_s19, 512, %s18_s23, [#allocation3], %s249_s20, %s249_s20, %s250_s21  }
   0x9   :  { %s43_s27 = sshll.u32 %s252_s1, 4  ;;  %s44_s27 = int_to_ptr.vmem [resolvable:$true] %s43_s27 }
   0xa   :  { %49 = dma.hbm_to_vmem [thread:$0]  %s42_s26, 512, %s44_s27, [#allocation6], %s249_s20, %s249_s20, %s250_s21  }
   0xb   :  { %242 = dma.done.wait [#allocation3], 512  }
   0xc   :  { %243 = vsyncadd [#allocation3], 4294966784 }
   0xd   :  { %244 = dma.done.wait [#allocation6], 768  }
   0xe   :  { %245 = vsyncadd [#allocation6], 4294966528  ;;  %v62_v0 = vld [vmem:[#allocation2] sm:$0xff]  ;;  %v63_v1 = vld [vmem:[#allocation2 + $0x8] sm:$0xff]  ;;  %vm90_vm0 = vcmask 1046528   ;;  %s253_s0 = smov [#allocation8]  }
   0xf   :  { %v64_v2 = vld [vmem:[#allocation2 + $0x10] sm:$0xff]  ;;  %v65_v3 = vld [vmem:[#allocation2 + $0x18] sm:$0xff]  ;;  %v66_v4 = vmin.f32 %v62_v0, 0.5  ;;  %v67_v5 = vmin.f32 %v63_v1, 0.5  ;;  %v84_v7 = vld [vmem:[#allocation5] sm:$0xff]  ;;  %s127_s2 = sshll.u32 %s253_s0, 4  ;;  %s128_s2 = int_to_ptr.vmem [resolvable:$true] %s127_s2 }
  0x10   :  { %v68_v6 = vmin.f32 %v64_v2, 0.5  ;;  %v100_v8 = vld [vmem:[#allocation7] sm:$0xff]  ;;  %v69_v9 = vmin.f32 %v65_v3, 0.5  ;;  %v85_v10 = vld [vmem:[#allocation5 + $0x8] sm:$0x7f]  ;;  %v86_v11 = vmin.f32 %v84_v7, 0.5 }
  0x11   :  { %v101_v12 = vld [vmem:[#allocation7 + $0x8] sm:$0xff]  ;;  %v102_v13 = vld [vmem:[#allocation7 + $0x10] sm:$0xff]  ;;  %v70_v14 = vand.u32 2147483647, %v66_v4  ;;  %v71_v15 = vand.u32 2147483647, %v67_v5 }
  0x12   :  { %v72_v16 = vand.u32 2147483647, %v68_v6  ;;  %v73_v17 = vand.u32 2147483647, %v69_v9  ;;  %v87_v18 = vmin.f32 %v85_v10, 0.5  ;;  %v103_v20 = vld [vmem:[#allocation7 + $0x18] sm:$0xff] }
  0x13   :  { %v88_v19 = vand.u32 2147483647, %v86_v11  ;;  %v74_v21 = vadd.f32 %v71_v15, %v70_v14  ;;  %v104_v22 = vmin.f32 %v100_v8, 0.5  ;;  %v105_v23 = vmin.f32 %v101_v12, 0.5  ;;  %s129_s30 = sshll.u32 %s290_s3, 4  ;;  %s130_s30 = int_to_ptr.hbm [resolvable:$true] %s129_s30 }
  0x14   :  { %v106_v24 = vmin.f32 %v102_v13, 0.5  ;;  %v89_v25 = vand.u32 2147483647, %v87_v18  ;;  %v107_v26 = vmin.f32 %v103_v20, 0.5 }
  0x15   :  { %v75_v27 = vadd.f32 %v74_v21, %v72_v16  ;;  %v108_v28 = vand.u32 2147483647, %v104_v22  ;;  %v109_v29 = vand.u32 2147483647, %v105_v23 }
  0x16   :  { %v110_v30 = vand.u32 2147483647, %v106_v24  ;;  %v91_v31 = vsel %vm90_vm0, %v89_v25, 0.0  ;;  %v111_v34 = vand.u32 2147483647, %v107_v26 }
  0x17   :  { %v76_v32 = vadd.f32 %v75_v27, %v73_v17  ;;  %v92_v33 = vadd.f32 %v91_v31, %v88_v19  ;;  %v112_v35 = vadd.f32 %v109_v29, %v108_v28 }
  0x19   :  { %v77_v36 = vrot.slane %v76_v32, 4  ;;  %v93_v37 = vrot.slane %v92_v33, 4  ;;  %v113_v38 = vadd.f32 %v112_v35, %v110_v30 }
  0x1b   :  { %v78_v39 = vadd.f32 %v77_v36, %v76_v32  ;;  %v94_v40 = vadd.f32 %v93_v37, %v92_v33  ;;  %v114_v41 = vadd.f32 %v113_v38, %v111_v34 }
  0x1d   :  { %v79_v42 = vrot.slane %v78_v39, 2  ;;  %v95_v43 = vrot.slane %v94_v40, 2  ;;  %v115_v44 = vrot.slane %v114_v41, 4 }
  0x1f   :  { %v80_v45 = vadd.f32 %v79_v42, %v78_v39  ;;  %v96_v46 = vadd.f32 %v95_v43, %v94_v40  ;;  %v116_v47 = vadd.f32 %v115_v44, %v114_v41 }
  0x21   :  { %v81_v48 = vrot.slane %v80_v45, 1  ;;  %v97_v49 = vrot.slane %v96_v46, 1  ;;  %v117_v50 = vrot.slane %v116_v47, 2 }
  0x23   :  { %v82_v51 = vadd.f32 %v81_v48, %v80_v45  ;;  %v98_v52 = vadd.f32 %v97_v49, %v96_v46  ;;  %v118_v53 = vadd.f32 %v117_v50, %v116_v47 }
  0x25   :  { %83 = vst [vmem:[#allocation8] sm:$0x1] %v82_v51  ;;  %v119_v54 = vrot.slane %v118_v53, 1 }
  0x26   :  { %99 = vst [vmem:[#allocation8 + $0x1] sm:$0x1] %v98_v52 }
  0x27   :  { %v120_v55 = vadd.f32 %v119_v54, %v118_v53 }
  0x29   :  { %121 = vst [vmem:[#allocation8 + $0x2] sm:$0x1] %v120_v55 }
  0x2a   :  { %132 = dma.vmem_to_hbm [thread:$0]  %s128_s2, 64, %s130_s30, [#allocation4]  }
  0x2b   :  { %246 = dma.done.wait [#allocation4], 64  }
  0x2c   :  { %247 = vsyncadd [#allocation4], 4294967232 }
  0x2d   :  { %137 = vsyncpa [#allocation3], 1 }
  0x2e   :  { %138 = vsyncpa [#allocation6], 1 }
  0x2f   :  { %139 = vsyncpa [#allocation4], 1 }

</bundles_post_ra>
